<compile_context>
chip_gen: v5e
topology: v5e:2x2
jax: 0.10.0
libtpu: 0.0.40
codegen_flags: <defaults>
</compile_context>

<pallas_src>
import functools
import math

import jax
import jax.numpy as jnp
from jax import lax
from jax.experimental import pallas as pl
from jax.experimental.pallas import tpu as pltpu

_CK = 128            # query/key channel dim padded to a full lane group
_MASK_VALUE = -1e30  # finite "-inf" (avoids inf-inf NaNs in the online softmax)


def _round_up(x, m):
    return ((x + m - 1) // m) * m


# ----------------------------- Kernel 1: fused K/V projection ----------------
def _kv_proj_kernel(x_ref, w_ref, b_ref, k_ref, v_ref):
    x_ct = x_ref[0]                                           # (C, tm) bf16, channel-first
    # kv[n, d] = sum_c x_ct[c, n] * w[c, d]   (transposed-lhs MXU matmul)
    kv = lax.dot_general(x_ct, w_ref[...], (((0,), (0,)), ((), ())),
                         preferred_element_type=jnp.float32) + b_ref[...]
    k_ref[0] = kv[:, :_CK].astype(jnp.bfloat16)               # lane-group aligned slice
    v_ref[0] = kv[:, _CK:].astype(jnp.bfloat16)


# --------------- Kernel 2: Q proj + flash attention + gamma*O + X ------------
def _pam_attn_kernel(x_ref, wq_ref, bq_ref, k_ref, v_ref, gamma_ref, o_ref,
                     m_sc, l_sc, acc_sc, *, tk, nk, n_valid):
    x_ct = x_ref[0]                                           # (C, tq) bf16
    # Q projection folded into the prologue (reuses the residual tile in VMEM).
    q = (lax.dot_general(x_ct, wq_ref[...], (((0,), (0,)), ((), ())),
                         preferred_element_type=jnp.float32)
         + bq_ref[...]).astype(jnp.bfloat16)                  # (tq, _CK)

    m_sc[...] = jnp.full_like(m_sc, _MASK_VALUE)
    l_sc[...] = jnp.zeros_like(l_sc)
    acc_sc[...] = jnp.zeros_like(acc_sc)

    needs_mask = n_valid < nk * tk                            # static Python bool

    def body(ki, carry):
        off = pl.multiple_of(ki * tk, tk)
        k = k_ref[0, pl.ds(off, tk), :]                       # (tk, _CK) bf16 (resident)
        v = v_ref[0, pl.ds(off, tk), :]                       # (tk, C)  bf16 (resident)
        # s_t[j, i] = <k_j, q_i>  (keys on sublanes, queries on lanes)
        s_t = lax.dot_general(k, q, (((1,), (1,)), ((), ())),
                              preferred_element_type=jnp.float32)  # (tk, tq) f32
        if needs_mask:
            key_idx = off + lax.broadcasted_iota(jnp.int32, (tk, 1), 0)
            s_t = jnp.where(key_idx < n_valid, s_t, _MASK_VALUE)

        m_prev = m_sc[...]
        m_new = jnp.maximum(m_prev, jnp.max(s_t, axis=0, keepdims=True))  # (1, tq)
        alpha = jnp.exp(m_prev - m_new)
        p_t = jnp.exp(s_t - m_new)                                        # (tk, tq)
        l_sc[...] = alpha * l_sc[...] + jnp.sum(p_t, axis=0, keepdims=True)
        # acc_ct[c, i] += sum_j v[j, c] * p_t[j, i]
        acc_sc[...] = alpha * acc_sc[...] + lax.dot_general(
            v, p_t.astype(jnp.bfloat16), (((0,), (0,)), ((), ())),
            preferred_element_type=jnp.float32)                          # (C, tq)
        m_sc[...] = m_new
        return carry

    lax.fori_loop(0, nk, body, 0, unroll=nk <= 8)

    gamma = gamma_ref[0]                                      # SMEM scalar
    # approx=True: EUP vrcp (free slot); ~1e-3 rel error, within tolerance.
    inv_l = pl.reciprocal(l_sc[...], approx=True)             # (1, tq)
    o_ref[0] = (gamma * (acc_sc[...] * inv_l)
                + x_ct.astype(jnp.float32)).astype(o_ref.dtype)


# ---------------------------------- Wrapper ----------------------------------
def pam_forward(x_nchw, wq, bq, wk, bk, wv, bv, gamma,
                *, block_m=512, block_q=512, block_k=512,
                vmem_limit_bytes=48 * 1024 * 1024):
    """PAM forward.  x_nchw: (B, C, H, W) f32.  Weights are (C_in, C_out)
    matmul matrices; biases (1, C_out); gamma (1,).  Blocks must be 128-multiples.
    vmem_limit default kept <= ~56 MiB for v7x; v5e/v6e can raise it."""
    B, C, H, W = x_nchw.shape
    N = H * W
    C8 = wq.shape[1]
    f32 = jnp.float32

    for blk in (block_m, block_q, block_k):
        assert blk % 128 == 0, "tile sizes must be multiples of 128"

    # Channel-first (B, C, N) view: pure reshape of NCHW, no transpose copy.
    x_bcn = x_nchw.reshape(B, C, N).astype(jnp.bfloat16)

    n128 = _round_up(N, 128)
    tm = min(block_m, n128)
    tq = min(block_q, n128)
    tk = min(block_k, n128)
    n_pad = _round_up(n128, math.lcm(tm, tq, tk))
    if n_pad != N:
        x_bcn = jnp.pad(x_bcn, ((0, 0), (0, 0), (0, n_pad - N)))

    # Zero-pad the query/key channel dim to 128 lanes (zero cols don't change q.k).
    wq_pad = jnp.zeros((C, _CK), f32).at[:, :C8].set(wq).astype(jnp.bfloat16)
    bq_pad = jnp.zeros((1, _CK), f32).at[:, :C8].set(bq)
    wk_pad = jnp.zeros((C, _CK), f32).at[:, :C8].set(wk)
    bk_pad = jnp.zeros((1, _CK), f32).at[:, :C8].set(bk)
    wkv = jnp.concatenate([wk_pad, wv], axis=1).astype(jnp.bfloat16)   # (C, _CK+C)
    bkv = jnp.concatenate([bk_pad, bv], axis=1).astype(f32)            # (1, _CK+C)
    d_kv = _CK + C

    # ---- Kernel 1: fused K/V projection --------------------------------------
    nm = n_pad // tm
    k_all, v_all = pl.pallas_call(
        _kv_proj_kernel,
        out_shape=(
            jax.ShapeDtypeStruct((B, n_pad, _CK), jnp.bfloat16),
            jax.ShapeDtypeStruct((B, n_pad, C), jnp.bfloat16),
        ),
        grid_spec=pltpu.PrefetchScalarGridSpec(
            num_scalar_prefetch=0,
            grid=(B, nm),
            in_specs=[
                pl.BlockSpec((1, C, tm), lambda b, i: (b, 0, i)),    # X (channel-first)
                pl.BlockSpec((C, d_kv), lambda b, i: (0, 0)),        # Wkv (resident)
                pl.BlockSpec((1, d_kv), lambda b, i: (0, 0)),        # bkv (resident)
            ],
            out_specs=[
                pl.BlockSpec((1, tm, _CK), lambda b, i: (b, i, 0)),  # K (lane-dense)
                pl.BlockSpec((1, tm, C), lambda b, i: (b, i, 0)),    # V
            ],
        ),
        compiler_params=pltpu.CompilerParams(
            dimension_semantics=("parallel", "parallel"),
            vmem_limit_bytes=vmem_limit_bytes),
    )(x_bcn, wkv, bkv)

    # ---- Kernel 2: Q proj + flash attention + residual ------------------------
    nq = n_pad // tq
    nk = n_pad // tk
    out_bcn = pl.pallas_call(
        functools.partial(_pam_attn_kernel, tk=tk, nk=nk, n_valid=N),
        out_shape=jax.ShapeDtypeStruct((B, C, n_pad), jnp.float32),
        grid_spec=pltpu.PrefetchScalarGridSpec(
            num_scalar_prefetch=0,
            grid=(B, nq),
            in_specs=[
                pl.BlockSpec((1, C, tq), lambda b, qi: (b, 0, qi)),      # X tile
                pl.BlockSpec((C, _CK), lambda b, qi: (0, 0)),            # Wq (resident)
                pl.BlockSpec((1, _CK), lambda b, qi: (0, 0)),            # bq (resident)
                pl.BlockSpec((1, n_pad, _CK), lambda b, qi: (b, 0, 0)),  # K (resident/batch)
                pl.BlockSpec((1, n_pad, C), lambda b, qi: (b, 0, 0)),    # V (resident/batch)
                pl.BlockSpec(memory_space=pltpu.MemorySpace.SMEM),       # gamma
            ],
            out_specs=pl.BlockSpec((1, C, tq), lambda b, qi: (b, 0, qi)),
            scratch_shapes=[
                pltpu.VMEM((1, tq), jnp.float32),   # running max m
                pltpu.VMEM((1, tq), jnp.float32),   # running denom l
                pltpu.VMEM((C, tq), jnp.float32),   # running accumulator (channel-first)
            ],
        ),
        compiler_params=pltpu.CompilerParams(
            dimension_semantics=("parallel", "parallel"),
            vmem_limit_bytes=vmem_limit_bytes),
    )(x_bcn, wq_pad, bq_pad, k_all, v_all, gamma)

    out = out_bcn[:, :, :N] if n_pad != N else out_bcn
    return out.reshape(B, C, H, W)


# --------------------------------- Reference ----------------------------------
def pam_reference(x_nchw, wq, bq, wk, bk, wv, bv, gamma):
    """Pure-JAX f32 reference mirroring the PyTorch forward."""
    B, C, H, W = x_nchw.shape
    N = H * W
    x_bnc = jnp.transpose(x_nchw.reshape(B, C, N), (0, 2, 1))      # (B, N, C)
    q = x_bnc @ wq + bq[0]
    k = x_bnc @ wk + bk[0]
    v = x_bnc @ wv + bv[0]
    energy = jnp.einsum('bic,bjc->bij', q, k)
    attn = jax.nn.softmax(energy, axis=-1)
    o = jnp.einsum('bij,bjc->bic', attn, v)
    out = gamma[0] * o + x_bnc
    return jnp.transpose(out, (0, 2, 1)).reshape(B, C, H, W)


if __name__ == "__main__":
    key = jax.random.PRNGKey(0)
    B, C, H, W = 2, 32, 16, 16       # in_dim=32 -> query/key dim = 32 // 8 = 4
    C8 = C // 8

    kx, kq, kbq, kk, kbk, kv, kbv = jax.random.split(key, 7)
    x = jax.random.normal(kx, (B, C, H, W), dtype=jnp.float32)
    wq = jax.random.normal(kq, (C, C8), dtype=jnp.float32) * 0.1
    bq = jax.random.normal(kbq, (1, C8), dtype=jnp.float32) * 0.1
    wk = jax.random.normal(kk, (C, C8), dtype=jnp.float32) * 0.1
    bk = jax.random.normal(kbk, (1, C8), dtype=jnp.float32) * 0.1
    wv = jax.random.normal(kv, (C, C), dtype=jnp.float32) * 0.1
    bv = jax.random.normal(kbv, (1, C), dtype=jnp.float32) * 0.1
    gamma = jnp.array([0.5], dtype=jnp.float32)   # nonzero so attention is exercised

    # 1) aligned shapes (N=256); small 128 tiles so the multi-key-tile loop runs.
    out = jax.block_until_ready(
        pam_forward(x, wq, bq, wk, bk, wv, bv, gamma,
                    block_m=128, block_q=128, block_k=128))
    ref = pam_reference(x, wq, bq, wk, bk, wv, bv, gamma)
    assert out.shape == (B, C, H, W)
    err = float(jnp.max(jnp.abs(out - ref)))
    assert jnp.allclose(out, ref, atol=3e-2, rtol=3e-2), f"aligned mismatch ({err})"

    # 2) gamma = 0 (PyTorch default init): residual-only path.
    gamma0 = jnp.zeros((1,), dtype=jnp.float32)
    out0 = jax.block_until_ready(
        pam_forward(x, wq, bq, wk, bk, wv, bv, gamma0,
                    block_m=128, block_q=128, block_k=128))
    ref0 = pam_reference(x, wq, bq, wk, bk, wv, bv, gamma0)
    err0 = float(jnp.max(jnp.abs(out0 - ref0)))
    assert jnp.allclose(out0, ref0, atol=3e-2, rtol=3e-2), f"gamma=0 mismatch ({err0})"

    # 3) ragged spatial size (N = 130): exercises padding + in-kernel key masking.
    xr = jax.random.normal(kx, (1, C, 10, 13), dtype=jnp.float32)
    outr = jax.block_until_ready(pam_forward(xr, wq, bq, wk, bk, wv, bv, gamma))
    refr = pam_reference(xr, wq, bq, wk, bk, wv, bv, gamma)
    errr = float(jnp.max(jnp.abs(outr - refr)))
    assert jnp.allclose(outr, refr, atol=3e-2, rtol=3e-2), f"ragged mismatch ({errr})"

    print("KERNEL_OK")
</pallas_src>

<mosaic_0001>
module attributes {stable_mosaic.version = 11 : i64} {
  func.func @_kv_proj_kernel(%arg0: i32, %arg1: i32, %arg2: memref<1x32x128xbf16, #tpu.memory_space<vmem>>, %arg3: memref<32x160xbf16, #tpu.memory_space<vmem>>, %arg4: memref<1x160xf32, #tpu.memory_space<vmem>>, %arg5: memref<1x128x128xbf16, #tpu.memory_space<vmem>>, %arg6: memref<1x128x32xbf16, #tpu.memory_space<vmem>>) attributes {dimension_semantics = [#tpu.dimension_semantics<parallel>, #tpu.dimension_semantics<parallel>], iteration_bounds = array<i64: 2, 2>, scalar_prefetch = 0 : i64, scratch_operands = 0 : i64, tpu.core_type = #tpu.core_type<tc>, window_params = [{transform_indices = @transform_0, window_bounds = array<i64: 1, 32, 128>}, {pipeline_mode = #tpu.pipeline_mode<synchronous>, transform_indices = @transform_1, window_bounds = array<i64: 32, 160>}, {pipeline_mode = #tpu.pipeline_mode<synchronous>, transform_indices = @transform_2, window_bounds = array<i64: 1, 160>}, {transform_indices = @transform_3, window_bounds = array<i64: 1, 128, 128>}, {transform_indices = @transform_4, window_bounds = array<i64: 1, 128, 32>}]} {
    %c0 = arith.constant 0 : index
    %c0_0 = arith.constant 0 : index
    %c0_1 = arith.constant 0 : index
    %0 = vector.load %arg2[%c0, %c0_0, %c0_1] : memref<1x32x128xbf16, #tpu.memory_space<vmem>>, vector<1x32x128xbf16>
    %1 = vector.shape_cast %0 : vector<1x32x128xbf16> to vector<32x128xbf16>
    %c0_2 = arith.constant 0 : index
    %c0_3 = arith.constant 0 : index
    %2 = vector.load %arg3[%c0_2, %c0_3] : memref<32x160xbf16, #tpu.memory_space<vmem>>, vector<32x160xbf16>
    %cst = arith.constant dense<0.000000e+00> : vector<128x160xf32>
    %3 = tpu.matmul %1, %2, %cst {dimension_numbers = #tpu.dot_dimension_numbers<[0], [0], [1], [1], [0, 1, 1, 1], [], []>} : vector<32x128xbf16>, vector<32x160xbf16>, vector<128x160xf32> -> vector<128x160xf32>
    %c0_4 = arith.constant 0 : index
    %c0_5 = arith.constant 0 : index
    %4 = vector.load %arg4[%c0_4, %c0_5] : memref<1x160xf32, #tpu.memory_space<vmem>>, vector<1x160xf32>
    %5 = vector.broadcast %4 : vector<1x160xf32> to vector<128x160xf32>
    %6 = arith.addf %3, %5 : vector<128x160xf32>
    %7 = vector.extract_strided_slice %6 {offsets = [0, 0], sizes = [128, 128], strides = [1, 1]} : vector<128x160xf32> to vector<128x128xf32>
    %8 = arith.truncf %7 : vector<128x128xf32> to vector<128x128xbf16>
    %c0_6 = arith.constant 0 : index
    %c0_7 = arith.constant 0 : index
    %c0_8 = arith.constant 0 : index
    %9 = vector.load %arg5[%c0_6, %c0_7, %c0_8] : memref<1x128x128xbf16, #tpu.memory_space<vmem>>, vector<1x128x128xbf16>
    %10 = vector.shape_cast %9 : vector<1x128x128xbf16> to vector<128x128xbf16>
    %11 = vector.shape_cast %8 : vector<128x128xbf16> to vector<1x128x128xbf16>
    tpu.vector_store %arg5[%c0_6, %c0_7, %c0_8], %11 {strides = array<i32>} : memref<1x128x128xbf16, #tpu.memory_space<vmem>>, vector<1x128x128xbf16>,
    %12 = vector.extract_strided_slice %6 {offsets = [0, 128], sizes = [128, 32], strides = [1, 1]} : vector<128x160xf32> to vector<128x32xf32>
    %13 = arith.truncf %12 : vector<128x32xf32> to vector<128x32xbf16>
    %c0_9 = arith.constant 0 : index
    %c0_10 = arith.constant 0 : index
    %c0_11 = arith.constant 0 : index
    %14 = vector.load %arg6[%c0_9, %c0_10, %c0_11] : memref<1x128x32xbf16, #tpu.memory_space<vmem>>, vector<1x128x32xbf16>
    %15 = vector.shape_cast %14 : vector<1x128x32xbf16> to vector<128x32xbf16>
    %16 = vector.shape_cast %13 : vector<128x32xbf16> to vector<1x128x32xbf16>
    tpu.vector_store %arg6[%c0_9, %c0_10, %c0_11], %16 {strides = array<i32>} : memref<1x128x32xbf16, #tpu.memory_space<vmem>>, vector<1x128x32xbf16>,
    return
  }
  func.func @transform_0(%arg0: i32, %arg1: i32) -> (i32, i32, i32) {
    %c0_i32 = arith.constant 0 : i32
    %c0_i32_0 = arith.constant 0 : i32
    return %arg0, %c0_i32, %arg1 : i32, i32, i32
  }
  func.func @transform_1(%arg0: i32, %arg1: i32) -> (i32, i32) {
    %c0_i32 = arith.constant 0 : i32
    %c0_i32_0 = arith.constant 0 : i32
    %c0_i32_1 = arith.constant 0 : i32
    return %c0_i32, %c0_i32_0 : i32, i32
  }
  func.func @transform_2(%arg0: i32, %arg1: i32) -> (i32, i32) {
    %c0_i32 = arith.constant 0 : i32
    %c0_i32_0 = arith.constant 0 : i32
    %c0_i32_1 = arith.constant 0 : i32
    return %c0_i32, %c0_i32_0 : i32, i32
  }
  func.func @transform_3(%arg0: i32, %arg1: i32) -> (i32, i32, i32) {
    %c0_i32 = arith.constant 0 : i32
    %c0_i32_0 = arith.constant 0 : i32
    return %arg0, %arg1, %c0_i32 : i32, i32, i32
  }
  func.func @transform_4(%arg0: i32, %arg1: i32) -> (i32, i32, i32) {
    %c0_i32 = arith.constant 0 : i32
    %c0_i32_0 = arith.constant 0 : i32
    return %arg0, %arg1, %c0_i32 : i32, i32, i32
  }
}

</mosaic_0001>

<bundles_post_ra>
// kernel: tpu_custom_call.1
= control target key start
LH: loop header
LB: loop body
LE: loop exit
PB: predicated region body
PF: predicated region fallthrough
CT: control target
= control target key end

     0   :  { %s1458_s0 = inlined_call_operand.hbm [shape: bf16[2,32,256], index: 0, kind: input, shape index: {}]   ;;  %s1459_s1 = inlined_call_operand.hbm [shape: bf16[32,160], index: 1, kind: input, shape index: {}]   ;;  %s1460_s2 = inlined_call_operand.hbm [shape: f32[1,160], index: 2, kind: input, shape index: {}]   ;;  %s1461_s3 = inlined_call_operand.hbm [shape: bf16[2,256,128], index: 3, kind: output, shape index: {0}]   ;;  %s1462_s4 = inlined_call_operand.vmem [shape: bf16[2,256,32], index: 4, kind: output, shape index: {1}]  }
   0x1   :  { %1470 = sst [smem:[#allocation17_spill]] %s1459_s1 }
   0x2   :  { %1471 = sst [smem:[#allocation18_spill]] %s1460_s2 }
   0x3   :  { %10 = vsyncpa [#allocation3], 0 }
   0x4   :  { %12 = vsyncpa [#allocation3 + $0x1], 0 }
   0x5   :  { %13 = vsyncpa [#allocation6], 0 }
   0x6   :  { %14 = vsyncpa [#allocation4], 0 }
   0x7   :  { %16 = vsyncpa [#allocation4 + $0x1], 0  ;;  %s1171_s15 = smov 0   ;;  %s1173_s16 = smov 0  }
   0x8   :  { %s1175_s17 = smov 0   ;;  %s1177_s18 = smov 0  }
   0x9   :  { %s1179_s19 = smov 0   ;;  %s1181_s20 = smov 0  }
   0xa   :  { %s1183_s21 = smov 0   ;;  %s1185_s22 = smov 0  }
   0xb LB: > { %1472 = sst [smem:[#allocation12_spill]] %s1108_s15  ;;  %s718_s23 = sadd.s32 4294967295, %s1136_s22   ;;  %s1136_s22 = sphi %s1185_s22, %s22_s22   ;;  %s1132_s21 = sphi %s1183_s21, %s1498_s21   ;;  %s1128_s20 = sphi %s1181_s20, %s1497_s20   ;;  %s1124_s19 = sphi %s1179_s19, %s1496_s19   ;;  %s1120_s18 = sphi %s1177_s18, %s1495_s18   ;;  %s1116_s17 = sphi %s1175_s17, %s1494_s17   ;;  %s1112_s16 = sphi %s1173_s16, %s1493_s16   ;;  %s1108_s15 = sphi %s1171_s15, %s1492_s15  }
   0xc   : > { %s719_s24 = sadd.s32 4294967294, %s1136_s22   ;;  %p56_p0 = scmp.ne.s32.totalorder %s1112_s16, %s1108_s15 }
   0xd   : > { %p1215_p1 = scmp.eq.s32.totalorder %s718_s23, 0  ;;  %p1219_p2 = scmp.eq.s32.totalorder %s718_s23, 3 }
   0xe   : > { %p130_p3 = scmp.eq.s32.totalorder %s719_s24, 3  ;;  %p720_p5 = scmp.ge.s32.totalorder %s1136_s22, 1 }
   0xf   : > { %p1225_p4 = por %p1215_p1, %p56_p0  ;;  %p165_p7 = scmp.lt.s32.totalorder %s1136_s22, 5 }
  0x10   : > { %p1230_p6 = por %p130_p3, %p56_p0  ;;  %s1478_s1 = sld [smem:[#allocation17_spill]] }
  0x11   : > { %p1238_p8 = pnand %p720_p5, %p165_p7  ;;  %s1138_s7 = smov [#allocation5]  }
  0x12   : > { %s1476_s28 = scalar_select %p1230_p6, 1, 0 }
  0x13   : > { %p850_p9 = pneg %p1238_p8  ;;  %s178_s8 = sshll.u32 %s1138_s7, 4  ;;  %s179_s8 = int_to_ptr.vmem [resolvable:$true] %s178_s8 }
  0x14   : > { %1477 = sst [smem:[#allocation13_spill]] %s1476_s28  ;;  %s1463_s12 = smov 128  }
  0x15   : > { %p851_p10 = pnand %p850_p9, %p1215_p1  ;;  %s1480_s2 = sld [smem:[#allocation18_spill]] }
  0x16   : > { %s176_s5 = sshll.u32 %s1478_s1, 4  ;;  %s1140_s13 = smov 8   ;;  %s177_s5 = int_to_ptr.hbm [resolvable:$true] %s176_s5 }
  0x17   : > { %853 = dma.hbm_to_vmem [thread:$0]  (!%p851_p10), %s177_s5, 512, %s179_s8, [#allocation6], %s1463_s12, %s1463_s12, %s1140_s13  }
  0x18   : > { %s1141_s14 = smov [#allocation7]   ;;  %s31_s24 = sadd.s32 1, %s1128_s20 }
  0x19   : > { %s193_s23 = sshll.u32 %s1141_s14, 4  ;;  %s34_s29 = sadd.s32 1, %s1132_s21  ;;  %s194_s23 = int_to_ptr.vmem [resolvable:$true] %s193_s23 }
  0x1a   : > { %p32_p11 = scmp.ge.s32.totalorder %s31_s24, 2  ;;  %s43_s30 = sadd.s32 1, %s1116_s17 }
  0x1b   : > { %s191_s11 = sshll.u32 %s1480_s2, 4  ;;  %p50_p12 = scmp.ne.s32.totalorder %s1116_s17, %s1112_s16  ;;  %s192_s11 = int_to_ptr.hbm [resolvable:$true] %s191_s11 }
  0x1c   : > { %856 = dma.hbm_to_vmem [thread:$0]  (!%p851_p10), %s192_s11, 32, %s194_s23, [#allocation6]  }
  0x1d   : > { %p51_p13 = scmp.eq.s32.totalorder %s1136_s22, 0  ;;  %s1500_s24 = smov (%p32_p11, %s31_s24), 0 }
  0x1e   : > { %1481 = sst [smem:[#allocation14_spill]] %s1500_s24  ;;  %s1502_s29 = smov (!%p32_p11, %s34_s29), %s1132_s21 }
  0x1f   : > { %s39_s5 = ssub.s32 %s1128_s20, %s1500_s24  ;;  %p1262_p0 = por %p51_p13, %p50_p12 }
  0x20   : > { %p36_p3 = scmp.ge.s32.totalorder %s1502_s29, 2  ;;  %p1268_p5 = por %p1219_p2, %p50_p12 }
  0x21   : > { %p867_p7 = scmp.lt.s32.totalorder %s1136_s22, 4  ;;  %s204_s9 = sand.u32 1, %s1116_s17  }
  0x22   : > { %s1483_s8 = scalar_select %p1268_p5, 1, 0 }
  0x23   : > { %s1504_s29 = smov (%p36_p3, %s1502_s29), 0  ;;  %s724_s10 = sshll.u32 %s204_s9, 4 }
  0x24   : > { %1484 = sst [smem:[#allocation15_spill]] %s1483_s8  ;;  %s38_s11 = ssub.s32 %s1132_s21, %s1504_s29 }
  0x25   : > { %1485 = sst [smem:[#allocation16_spill]] %s1504_s29  ;;  %s40_s13 = sor.u32 %s39_s5, %s38_s11 }
  0x26   : > { %s725_s14 = sshll.u32 %s1132_s21, 3  ;;  %p41_p9 = scmp.eq.s32.totalorder %s40_s13, 0 }
  0x27   : > { %s212_s23 = sadd.s32 %s1128_s20, %s725_s14  ;;  %s208_s1 = scalar_lea.vmem [#allocation2], %s724_s10 }
  0x28   : > { %s726_s12 = sshll.u32 %s212_s23, 2  ;;  %s217_s26 = sshll.u32 %s208_s1, 4  ;;  %s218_s26 = int_to_ptr.vmem [resolvable:$true] %s217_s26 }
  0x29   : > { %s1281_s2 = scalar_select %p41_p9, %s1116_s17, %s43_s30  }
  0x2a   : > { %s214_s15 = scalar_lea.hbm %s1458_s0, %s726_s12  ;;  %p858_p2 = pnand %p867_p7, %p1262_p0 }
  0x2b   : > { %s215_s8 = sshll.u32 %s214_s15, 4  ;;  %s205_s29 = scalar_lea.sflag [#allocation3], %s204_s9  ;;  %s216_s8 = int_to_ptr.hbm [resolvable:$true] %s215_s8 }
  0x2c   : > { %s1142_s5 = smov 64   ;;  %s1143_s11 = smov 4  }
  0x2d   : > { %s1486_s13 = smov 128   ;;  %229 = sbr.rel (%p1238_p8) target bundleno = 488 (0x1e8), region = 32 }
  0x2e   : > { %860 = dma.hbm_to_vmem [thread:$0]  (!%p858_p2), %s216_s8, 256, %s218_s26, %s205_s29, %s1486_s13, %s1142_s5, %s1143_s11  }
  0x2f   : > { %s1294_s1 = sand.u32 (!%p1238_p8), 1, %s1112_s16  }
  0x30   : > { %s728_s28 = sshll.u32 (!%p1238_p8), %s1294_s1, 4  ;;  %s232_s15 = scalar_lea.sflag (!%p1238_p8), [#allocation3], %s1294_s1 }
  0x31   : > { %s235_s12 = scalar_lea.vmem (!%p1238_p8), [#allocation2], %s728_s28 }
  0x32   : > { %1095 = dma.done.wait (%p1225_p4), %s232_s15, 256  }
  0x33   : > { %1097 = vsyncadd (%p1225_p4), %s232_s15, 4294967040 }
  0x34   : > { %1099 = dma.done.wait (%p1215_p1), [#allocation6], 544  }
  0x35   : > { %1101 = vsyncadd (%p1215_p1), [#allocation6], 4294966752  ;;  %v781_v0 = vld [vmem:[%s235_s12] sm:$0xff]  ;;  %v786_v2 = vld [vmem:[#allocation5 + $0x14] sm:$0xf0]  ;;  %vm354_vm0 = vcmask 261120  }
  0x36   : > { %v753_v1 = vld [vmem:[#allocation5 + $0x10] sm:$0xf]  ;;  %v785_v3 = vld [vmem:[#allocation5 + $0x14] sm:$0xf]  ;;  %v755_v4 = vld [vmem:[#allocation5 + $0x18] sm:$0xf0]  ;;  %318 = vxpose.xlu0.c.b16.start [1/2] (short) %v781_v0, 128 }
  0x37   : > { %v754_v5 = vor.u32 %v786_v2, %v753_v1  ;;  %v758_v6 = vor.u32 %v785_v3, %v755_v4  ;;  %v745_v7 = vld [vmem:[#allocation5] sm:$0xf]  ;;  %v784_v8 = vld [vmem:[#allocation5 + $0x4] sm:$0xf0]  ;;  %v783_v9 = vld [vmem:[#allocation5 + $0x4] sm:$0xf] }
  0x38   : > { %v747_v10 = vld [vmem:[#allocation5 + $0x8] sm:$0xf0]  ;;  %v746_v11 = vor.u32 %v784_v8, %v745_v7  ;;  %s1321_s25 = sshll.u32 %s1120_s18, 4  ;;  %p282_p1 = scmp.lt.s32.totalorder %s1124_s19, 1  ;;  %v300_v22 = vld [vmem:[#allocation7] sm:$0x3] }
  0x39   : > { %385 = vmatpush.bf16.msra.mxu0 %v754_v5  ;;  %434 = vmatpush.bf16.msra.mxu1 %v758_v6  ;;  %v750_v12 = vor.u32 %v783_v9, %v747_v10  ;;  %v782_v13 = vld [vmem:[%s235_s12 + $0x8] sm:$0xff]  ;;  %p284_p4 = scmp.lt.s32.totalorder %s1321_s25, 31  ;;  %v1329_v23 = vperm.slane %v300_v22, 1  ;;  %vm525_vm1 = vcmask 257024   ;;  %v1337_v27 = vperm.slane %v300_v22, 0  ;;  %s731_s9 = sshll.u32 %s1294_s1, 6 }
  0x3a   : > { %834 = vmatpush.bf16.msra.mxu2 %v754_v5  ;;  %836 = vmatpush.bf16.msra.mxu3 %v758_v6  ;;  %s283_s27 = scalar_select %p282_p1, %s1124_s19, 1 }
  0x3b   : > { %s285_s6 = scalar_select %p284_p4, %s1321_s25, 31 }
  0x3c   : > { %s733_s24 = sshll.u32 %s283_s27, 5  ;;  %s1345_s10 = scalar_lea.vmem [#allocation8], %s731_s9 }
  0x3d   : > { %386 = vmatpush.bf16.msra.mxu0 %v746_v11  ;;  %435 = vmatpush.bf16.msra.mxu1 %v750_v12  ;;  %s287_s29 = sadd.s32 %s733_s24, %s285_s6  ;;  %s777_s14 = sshll.u32 %s1124_s19, 5 }
  0x3e   : > { %835 = vmatpush.bf16.msra.mxu2 %v746_v11  ;;  %837 = vmatpush.bf16.msra.mxu3 %v750_v12  ;;  %s734_s30 = sshll.u32 %s287_s29, 2  ;;  %s563_s23 = sadd.s32 %s777_s14, %s1321_s25 }
  0x3f   : > { %s1335_s8 = scalar_lea.vmem %s1462_s4, %s734_s30  ;;  %s778_s26 = sshll.u32 %s563_s23, 2 }
  0x40   : > { %s565_s13 = scalar_lea.hbm %s1461_s3, %s778_s26  ;;  %s566_s19 = sshll.u32 %s1345_s10, 4  ;;  %s567_s19 = int_to_ptr.vmem [resolvable:$true] %s566_s19 }
  0x41   : > { %s568_s15 = sshll.u32 %s565_s13, 4  ;;  %s543_s12 = scalar_lea.sflag [#allocation4], %s1294_s1  ;;  %s569_s15 = int_to_ptr.hbm [resolvable:$true] %s568_s15 }
  0x42   : > { %s1048_s25 = sshra.s32 %s569_s15, 4  ;;  %s1054_s29 = scalar_lea.hbm %s1461_s3, 256  ;;  %s1049_s25 = int_to_ptr.hbm [resolvable:$true] %s1048_s25 }
  0x43   : > { %s1050_s27 = scalar_lea.hbm %s1049_s25, 64  ;;  %p1055_p12 = scmp.lt.s32.totalorder %s1049_s25, %s1461_s3 }
  0x44   : > { %p1051_p8 = scmp.ne.s32.totalorder %s1049_s25, %s1050_s27  ;;  %p1056_p13 = scmp.lt.s32.totalorder %s1054_s29, %s1050_s27 }
  0x46   : > { %319 = vxpose.xlu0.c.b16.end [2/2] (short) %v782_v13, 128  ;;  %p1052_p10 = pnand %p1051_p8, %p1268_p5  ;;  %p1057_p0 = por %p1056_p13, %p1055_p12 }
  0x48   : > { %p1053_p11 = pneg %p1052_p10 }
  0x4a   : > { %p1058_p3 = pnand %p1057_p0, %p1053_p11 }
  0xe2   : > { %v326_v14 = vpop.trf.xlu0 }
  0xe3   : > { %759 = vmatmul.msk.bf16.vlgmr.msra.gmra.mxu0 %vm354_vm0, %v326_v14  ;;  %767 = vmatmul.msk.bf16.vlgmr.msra.gmra.mxu1 %vm354_vm0, %v326_v14 }
  0xf2   : > { %v327_v15 = vpop.trf.xlu0 }
  0xf3   : > { %760 = vmatmul.msk.bf16.gmra.mxu0 %vm354_vm0, %v327_v15  ;;  %768 = vmatmul.msk.bf16.gmra.mxu1 %vm354_vm0, %v327_v15 }
 0x102   : > { %v328_v16 = vpop.trf.xlu0 }
 0x103   : > { %761 = vmatmul.msk.bf16.gmra.mxu0 %vm354_vm0, %v328_v16  ;;  %769 = vmatmul.msk.bf16.gmra.mxu1 %vm354_vm0, %v328_v16 }
 0x112   : > { %v329_v17 = vpop.trf.xlu0 }
 0x113   : > { %762 = vmatmul.msk.bf16.gmra.mxu0 %vm354_vm0, %v329_v17  ;;  %770 = vmatmul.msk.bf16.gmra.mxu1 %vm354_vm0, %v329_v17 }
 0x122   : > { %v330_v18 = vpop.trf.xlu0 }
 0x123   : > { %763 = vmatmul.msk.bf16.vlgmr.msra.gmra.mxu2 %vm354_vm0, %v330_v18  ;;  %771 = vmatmul.msk.bf16.vlgmr.msra.gmra.mxu3 %vm354_vm0, %v330_v18 }
 0x132   : > { %v331_v19 = vpop.trf.xlu0 }
 0x133   : > { %764 = vmatmul.msk.bf16.gmra.mxu2 %vm354_vm0, %v331_v19  ;;  %772 = vmatmul.msk.bf16.gmra.mxu3 %vm354_vm0, %v331_v19 }
 0x142   : > { %v332_v20 = vpop.trf.xlu0 }
 0x143   : > { %765 = vmatmul.msk.bf16.gmra.mxu2 %vm354_vm0, %v332_v20  ;;  %773 = vmatmul.msk.bf16.gmra.mxu3 %vm354_vm0, %v332_v20 }
 0x152   : > { %v333_v21 = vpop.trf.xlu0 }
 0x153   : > { %766 = vmatmul.msk.bf16.gmra.mxu2 %vm354_vm0, %v333_v21  ;;  %774 = vmatmul.msk.bf16.gmra.mxu3 %vm354_vm0, %v333_v21 }
 0x160   : > { %v388_v24 = vpop.f32.mrf.mxu0  ;;  %v437_v25 = vpop.f32.mrf.mxu1 }
 0x161   : > { %v438_v26 = vadd.f32 %v437_v25, %v1329_v23  ;;  %v389_v29 = vadd.f32 %v388_v24, %v1337_v27 }
 0x163   : > { %v509_v28 = vpack.c.bf16 %v438_v26, %v438_v26 }
 0x165   : > { %526 = vst.msk [vmem:[%s1335_s8] sm:$0xf] %vm525_vm1, %v509_v28 }
 0x168   : > { %v390_v30 = vpop.f32.mrf.mxu0  ;;  %v439_v31 = vpop.f32.mrf.mxu1 }
 0x169   : > { %v391_v32 = vadd.f32 %v390_v30, %v1337_v27  ;;  %v440_v33 = vadd.f32 %v439_v31, %v1329_v23 }
 0x16b   : > { %v790_v34 = vpack.c.bf16 %v391_v32, %v389_v29  ;;  %v510_v35 = vpack.c.bf16 %v440_v33, %v440_v33 }
 0x16d   : > { %791 = vst [vmem:[%s1345_s10] sm:$0xff] %v790_v34  }
 0x16e   : > { %527 = vst.msk [vmem:[%s1335_s8 + $0x4] sm:$0xf] %vm525_vm1, %v510_v35 }
 0x170   : > { %v393_v36 = vpop.f32.mrf.mxu0  ;;  %v442_v37 = vpop.f32.mrf.mxu1 }
 0x171   : > { %v443_v38 = vadd.f32 %v442_v37, %v1329_v23  ;;  %v394_v40 = vadd.f32 %v393_v36, %v1337_v27 }
 0x173   : > { %v511_v39 = vpack.c.bf16 %v443_v38, %v443_v38 }
 0x175   : > { %528 = vst.msk [vmem:[%s1335_s8 + $0x8] sm:$0xf] %vm525_vm1, %v511_v39 }
 0x178   : > { %v395_v41 = vpop.f32.mrf.mxu0  ;;  %v444_v42 = vpop.f32.mrf.mxu1 }
 0x179   : > { %v396_v43 = vadd.f32 %v395_v41, %v1337_v27  ;;  %v445_v44 = vadd.f32 %v444_v42, %v1329_v23 }
 0x17b   : > { %v795_v45 = vpack.c.bf16 %v396_v43, %v394_v40  ;;  %v512_v46 = vpack.c.bf16 %v445_v44, %v445_v44 }
 0x17d   : > { %827 = vst [vmem:[%s1345_s10 + $0x8] sm:$0xff] %v795_v45  }
 0x17e   : > { %529 = vst.msk [vmem:[%s1335_s8 + $0xc] sm:$0xf] %vm525_vm1, %v512_v46 }
 0x180   : > { %v398_v47 = vpop.f32.mrf.mxu0  ;;  %v447_v48 = vpop.f32.mrf.mxu1 }
 0x181   : > { %v448_v49 = vadd.f32 %v447_v48, %v1329_v23  ;;  %v399_v51 = vadd.f32 %v398_v47, %v1337_v27 }
 0x183   : > { %v513_v50 = vpack.c.bf16 %v448_v49, %v448_v49 }
 0x185   : > { %530 = vst.msk [vmem:[%s1335_s8 + $0x10] sm:$0xf] %vm525_vm1, %v513_v50 }
 0x188   : > { %v400_v52 = vpop.f32.mrf.mxu0  ;;  %v449_v53 = vpop.f32.mrf.mxu1 }
 0x189   : > { %v401_v54 = vadd.f32 %v400_v52, %v1337_v27  ;;  %v450_v55 = vadd.f32 %v449_v53, %v1329_v23 }
 0x18b   : > { %v800_v56 = vpack.c.bf16 %v401_v54, %v399_v51  ;;  %v514_v57 = vpack.c.bf16 %v450_v55, %v450_v55 }
 0x18d   : > { %828 = vst [vmem:[%s1345_s10 + $0x10] sm:$0xff] %v800_v56  }
 0x18e   : > { %531 = vst.msk [vmem:[%s1335_s8 + $0x14] sm:$0xf] %vm525_vm1, %v514_v57 }
 0x190   : > { %v403_v58 = vpop.f32.mrf.mxu0  ;;  %v452_v59 = vpop.f32.mrf.mxu1 }
 0x191   : > { %v453_v60 = vadd.f32 %v452_v59, %v1329_v23  ;;  %v404_v62 = vadd.f32 %v403_v58, %v1337_v27 }
 0x193   : > { %v515_v61 = vpack.c.bf16 %v453_v60, %v453_v60 }
 0x195   : > { %532 = vst.msk [vmem:[%s1335_s8 + $0x18] sm:$0xf] %vm525_vm1, %v515_v61 }
 0x198   : > { %v405_v63 = vpop.f32.mrf.mxu0  ;;  %v454_v0 = vpop.f32.mrf.mxu1 }
 0x199   : > { %v406_v1 = vadd.f32 %v405_v63, %v1337_v27  ;;  %v455_v2 = vadd.f32 %v454_v0, %v1329_v23 }
 0x19b   : > { %v805_v3 = vpack.c.bf16 %v406_v1, %v404_v62  ;;  %v516_v4 = vpack.c.bf16 %v455_v2, %v455_v2 }
 0x19d   : > { %829 = vst [vmem:[%s1345_s10 + $0x18] sm:$0xff] %v805_v3  }
 0x19e   : > { %533 = vst.msk [vmem:[%s1335_s8 + $0x1c] sm:$0xf] %vm525_vm1, %v516_v4 }
 0x1a6   : > { %v408_v5 = vpop.f32.mrf.mxu2  ;;  %v457_v6 = vpop.f32.mrf.mxu3 }
 0x1a7   : > { %v458_v7 = vadd.f32 %v457_v6, %v1329_v23  ;;  %v409_v11 = vadd.f32 %v408_v5, %v1337_v27 }
 0x1a9   : > { %v517_v8 = vpack.c.bf16 %v458_v7, %v458_v7 }
 0x1ab   : > { %534 = vst.msk [vmem:[%s1335_s8 + $0x20] sm:$0xf] %vm525_vm1, %v517_v8 }
 0x1ae   : > { %v410_v9 = vpop.f32.mrf.mxu2  ;;  %v459_v10 = vpop.f32.mrf.mxu3 }
 0x1af   : > { %v411_v12 = vadd.f32 %v410_v9, %v1337_v27  ;;  %v460_v13 = vadd.f32 %v459_v10, %v1329_v23 }
 0x1b1   : > { %v810_v14 = vpack.c.bf16 %v411_v12, %v409_v11  ;;  %v518_v15 = vpack.c.bf16 %v460_v13, %v460_v13 }
 0x1b3   : > { %830 = vst [vmem:[%s1345_s10 + $0x20] sm:$0xff] %v810_v14  }
 0x1b4   : > { %535 = vst.msk [vmem:[%s1335_s8 + $0x24] sm:$0xf] %vm525_vm1, %v518_v15 }
 0x1b6   : > { %v413_v16 = vpop.f32.mrf.mxu2  ;;  %v462_v17 = vpop.f32.mrf.mxu3 }
 0x1b7   : > { %v463_v18 = vadd.f32 %v462_v17, %v1329_v23  ;;  %v414_v22 = vadd.f32 %v413_v16, %v1337_v27 }
 0x1b9   : > { %v519_v19 = vpack.c.bf16 %v463_v18, %v463_v18 }
 0x1bb   : > { %536 = vst.msk [vmem:[%s1335_s8 + $0x28] sm:$0xf] %vm525_vm1, %v519_v19 }
 0x1be   : > { %v415_v20 = vpop.f32.mrf.mxu2  ;;  %v464_v21 = vpop.f32.mrf.mxu3 }
 0x1bf   : > { %v416_v24 = vadd.f32 %v415_v20, %v1337_v27  ;;  %v465_v25 = vadd.f32 %v464_v21, %v1329_v23 }
 0x1c1   : > { %v815_v26 = vpack.c.bf16 %v416_v24, %v414_v22  ;;  %v520_v28 = vpack.c.bf16 %v465_v25, %v465_v25 }
 0x1c3   : > { %831 = vst [vmem:[%s1345_s10 + $0x28] sm:$0xff] %v815_v26  }
 0x1c4   : > { %537 = vst.msk [vmem:[%s1335_s8 + $0x2c] sm:$0xf] %vm525_vm1, %v520_v28 }
 0x1c6   : > { %v418_v29 = vpop.f32.mrf.mxu2  ;;  %v467_v30 = vpop.f32.mrf.mxu3 }
 0x1c7   : > { %v468_v31 = vadd.f32 %v467_v30, %v1329_v23  ;;  %v419_v35 = vadd.f32 %v418_v29, %v1337_v27 }
 0x1c9   : > { %v521_v32 = vpack.c.bf16 %v468_v31, %v468_v31 }
 0x1cb   : > { %538 = vst.msk [vmem:[%s1335_s8 + $0x30] sm:$0xf] %vm525_vm1, %v521_v32 }
 0x1ce   : > { %v420_v33 = vpop.f32.mrf.mxu2  ;;  %v469_v34 = vpop.f32.mrf.mxu3 }
 0x1cf   : > { %v421_v36 = vadd.f32 %v420_v33, %v1337_v27  ;;  %v470_v37 = vadd.f32 %v469_v34, %v1329_v23 }
 0x1d1   : > { %v820_v38 = vpack.c.bf16 %v421_v36, %v419_v35  ;;  %v522_v39 = vpack.c.bf16 %v470_v37, %v470_v37 }
 0x1d3   : > { %832 = vst [vmem:[%s1345_s10 + $0x30] sm:$0xff] %v820_v38  }
 0x1d4   : > { %539 = vst.msk [vmem:[%s1335_s8 + $0x34] sm:$0xf] %vm525_vm1, %v522_v39 }
 0x1d6   : > { %v423_v40 = vpop.f32.mrf.mxu2  ;;  %v472_v41 = vpop.f32.mrf.mxu3 }
 0x1d7   : > { %v473_v42 = vadd.f32 %v472_v41, %v1329_v23  ;;  %v424_v46 = vadd.f32 %v423_v40, %v1337_v27 }
 0x1d9   : > { %v523_v43 = vpack.c.bf16 %v473_v42, %v473_v42 }
 0x1db   : > { %540 = vst.msk [vmem:[%s1335_s8 + $0x38] sm:$0xf] %vm525_vm1, %v523_v43 }
 0x1de   : > { %v425_v44 = vpop.f32.mrf.mxu2  ;;  %v474_v45 = vpop.f32.mrf.mxu3 }
 0x1df   : > { %v426_v47 = vadd.f32 %v425_v44, %v1337_v27  ;;  %v475_v48 = vadd.f32 %v474_v45, %v1329_v23 }
 0x1e1   : > { %v825_v49 = vpack.c.bf16 %v426_v47, %v424_v46  ;;  %v524_v50 = vpack.c.bf16 %v475_v48, %v475_v48 }
 0x1e3   : > { %833 = vst [vmem:[%s1345_s10 + $0x38] sm:$0xff] %v825_v49  }
 0x1e4   : > { %541 = vst.msk [vmem:[%s1335_s8 + $0x3c] sm:$0xf] %vm525_vm1, %v524_v50 }
 0x1e5   : > { %1061 = shalt.err (!%p1058_p3)
}
 0x1e6   : > { %s1144_s1 = smov 64   ;;  %s1145_s7 = smov 4  }
 0x1e7   : > { %848 = dma.vmem_to_hbm [thread:$0]  (%p1268_p5), %s567_s19, 1024, %s569_s15, %s543_s12, %s1144_s1, %s1144_s1, %s1145_s7  }
 0x1e8 PF: > { %s1488_s8 = sld [smem:[#allocation12_spill]]  ;;  %p870_p7 = scmp.ge.s32.totalorder %s1136_s22, 2 }
 0x1ea   : > { %p862_p9 = pnand %p870_p7, %p1230_p6 }
 0x1ec   : > { %p863_p2 = pneg %p862_p9 }
 0x1ee   : > { %s587_s10 = sand.u32 1, %s1488_s8  }
 0x1ef   : > { %s588_s14 = scalar_lea.sflag [#allocation4], %s587_s10 }
 0x1f0   : > { %1103 = dma.done.wait (%p863_p2), %s588_s14, 1024  }
 0x1f1   : > { %1105 = vsyncadd (%p863_p2), %s588_s14, 4294966272  ;;  %s22_s22 = sadd.s32 1, %s1136_s22   ;;  %s1490_s23 = sld [smem:[#allocation14_spill]] }
 0x1f2   : > { %p19_p1 = scmp.ge.s32.totalorder %s22_s22, 6   ;;  %s1491_s26 = sld [smem:[#allocation16_spill]] }
 0x1f3   : > { %s1492_s15 = smov %s1112_s16  ;;  %s1493_s16 = smov %s1116_s17 }
 0x1f4   : > { %s1494_s17 = smov %s1281_s2  ;;  %s1495_s18 = smov %s1128_s20 }
 0x1f5   : > { %s1496_s19 = smov %s1132_s21  ;;  %21 = sbr.rel (!%p19_p1) target bundleno = 11 (0xb), region = 97 }
 0x1f7   : > { %s1497_s20 = smov %s1490_s23 }
 0x1f8   : > { %s1498_s21 = smov %s1491_s26 }
 0x1fa   :  { %606 = vsyncpa [#allocation3], 1 }
 0x1fb   :  { %608 = vsyncpa [#allocation3 + $0x1], 1 }
 0x1fc   :  { %609 = vsyncpa [#allocation6], 1 }
 0x1fd   :  { %610 = vsyncpa [#allocation4], 1 }
 0x1fe   :  { %612 = vsyncpa [#allocation4 + $0x1], 1 }

</bundles_post_ra>
